<compile_context>
chip_gen: v7x
topology: tpu7x:2x2x1
jax: 0.10.0
libtpu: 0.0.40
codegen_flags: <defaults>
</compile_context>

<pallas_src>
import functools

import jax
import jax.numpy as jnp
from jax.experimental import pallas as pl
from jax.experimental.pallas import tpu as pltpu

LANES = 128
TARGET_BLOCK_ROWS = 8192      # 8192*128*4B = 4 MiB per f32 input block
NUM_CORES = 2                 # v7x has 2 TensorCores/chip; extra accumulator is harmless elsewhere
VMEM_LIMIT_BYTES = 40 << 20   # 2 inputs x 2 bufs x 4 MiB = 16 MiB + headroom


def _mse_partial_kernel(y_ref, t_ref, o_ref, *, block_rows, acc_rows,
                        steps_per_core, rows_valid, need_mask):
    """Accumulates per-(sublane,lane) partial sums of squared error into o_ref.

    o_ref is an (acc_rows, 128) f32 block whose index depends only on the core
    axis, so it stays resident in VMEM across the reduction axis (P3 pattern).
    """
    c = pl.program_id(0)   # core (parallel)
    i = pl.program_id(1)   # reduction step (arbitrary)

    @pl.when(i == 0)
    def _():
        o_ref[...] = jnp.zeros_like(o_ref)

    d = y_ref[...].astype(jnp.float32) - t_ref[...].astype(jnp.float32)
    sq = d * d

    def accumulate(vals):
        # (block_rows,128) -> (block_rows//acc_rows, acc_rows, 128); reducing
        # axis 0 is pure VPU vreg adds (no cross-lane / cross-sublane movement),
        # spread over acc_rows//8 independent add chains.
        o_ref[...] += jnp.sum(
            vals.reshape(block_rows // acc_rows, acc_rows, LANES), axis=0)

    if need_mask:
        block_start = (c * steps_per_core + i) * block_rows
        is_ragged = block_start + block_rows > rows_valid

        @pl.when(is_ragged)
        def _():
            # Only the block(s) that overrun the slab pay for the mask; OOB
            # garbage (even NaN/Inf) is dropped by the select.
            row_ids = block_start + jax.lax.broadcasted_iota(jnp.int32, sq.shape, 0)
            accumulate(jnp.where(row_ids < rows_valid, sq, 0.0))

        @pl.when(jnp.logical_not(is_ragged))
        def _():
            accumulate(sq)
    else:
        accumulate(sq)


def _mse_sum_aligned(y2d, t2d, rows):
    """Sum of squared differences over a tile-aligned (rows, 128) slab."""
    block_rows = min(TARGET_BLOCK_ROWS, rows)
    total_blocks = pl.cdiv(rows, block_rows)
    num_cores = min(NUM_CORES, total_blocks)
    steps_per_core = pl.cdiv(total_blocks, num_cores)
    covered_rows = num_cores * steps_per_core * block_rows
    need_mask = covered_rows != rows
    excess_blocks = num_cores * steps_per_core - total_blocks

    # Widest accumulator that divides the block (64 rows when possible).
    acc_rows = next(r for r in (64, 32, 16, 8) if block_rows % r == 0)

    if excess_blocks:
        # Rectangular grid may over-cover by up to num_cores-1 blocks; clamp the
        # input index so no DMA reads fully out of bounds (the kernel mask zeros
        # that block's contribution anyway).
        def in_map(c, i):
            return (jnp.minimum(c * steps_per_core + i, total_blocks - 1), 0)
    else:
        def in_map(c, i):
            return (c * steps_per_core + i, 0)

    kernel = functools.partial(
        _mse_partial_kernel,
        block_rows=block_rows, acc_rows=acc_rows,
        steps_per_core=steps_per_core, rows_valid=rows, need_mask=need_mask)

    itemsize = jnp.dtype(y2d.dtype).itemsize
    cost = pl.CostEstimate(
        flops=3 * rows * LANES,
        transcendentals=0,
        bytes_accessed=2 * rows * LANES * itemsize + num_cores * acc_rows * LANES * 4)

    partial = pl.pallas_call(
        kernel,
        out_shape=jax.ShapeDtypeStruct((num_cores * acc_rows, LANES), jnp.float32),
        grid_spec=pltpu.PrefetchScalarGridSpec(
            num_scalar_prefetch=0,
            grid=(num_cores, steps_per_core),
            in_specs=[
                pl.BlockSpec((block_rows, LANES), in_map),
                pl.BlockSpec((block_rows, LANES), in_map),
            ],
            out_specs=pl.BlockSpec((acc_rows, LANES), lambda c, i: (c, 0)),
        ),
        compiler_params=pltpu.CompilerParams(
            dimension_semantics=("parallel", "arbitrary"),
            vmem_limit_bytes=VMEM_LIMIT_BYTES,
        ),
        cost_estimate=cost,
    )(y2d, t2d)

    # Final cross-lane/cross-core reduction happens once, in the wrapper.
    return jnp.sum(partial)


def change_loss(y_change: jax.Array, target: jax.Array) -> jax.Array:
    """MSE loss between y_change and target (matches nn.MSELoss(), mean reduction)."""
    assert y_change.shape == target.shape
    n = y_change.size

    y_flat = y_change.reshape(-1)
    t_flat = target.reshape(-1)

    # Tile alignment requirement depends on dtype packing (f32: 8 rows, bf16: 16 rows).
    itemsize = jnp.dtype(y_change.dtype).itemsize
    row_align = 8 * max(1, 4 // itemsize)
    min_tile = row_align * LANES

    aligned = (n // min_tile) * min_tile

    if aligned == 0:
        # Tiny input (< one tile): plain JAX is both correct and fastest.
        d = y_flat.astype(jnp.float32) - t_flat.astype(jnp.float32)
        return jnp.sum(d * d) / jnp.float32(n)

    rows = aligned // LANES  # multiple of row_align by construction

    # Aligned n: reshape is free (no HBM copy). Misaligned n: slice the
    # tile-aligned prefix (no full-tensor jnp.pad) and fold the small tail in
    # with plain JAX below.
    y2d = (y_flat if aligned == n else y_flat[:aligned]).reshape(rows, LANES)
    t2d = (t_flat if aligned == n else t_flat[:aligned]).reshape(rows, LANES)

    total = _mse_sum_aligned(y2d, t2d, rows)

    if aligned != n:
        dt = y_flat[aligned:].astype(jnp.float32) - t_flat[aligned:].astype(jnp.float32)
        total = total + jnp.sum(dt * dt)

    # Mean uses the true, unpadded element count.
    return total / jnp.float32(n)


if __name__ == "__main__":
    key = jax.random.PRNGKey(0)
    k1, k2, k3, k4, k5, k6, k7, k8 = jax.random.split(key, 8)

    # 1) Small tile-aligned NCHW change map (free-reshape fast path).
    y1 = jax.random.normal(k1, (2, 4, 16, 16), dtype=jnp.float32)
    t1 = jax.random.normal(k2, (2, 4, 16, 16), dtype=jnp.float32)
    l1 = change_loss(y1, t1)
    jax.block_until_ready(l1)
    r1 = jnp.mean((y1 - t1) ** 2)
    assert jnp.allclose(l1, r1, rtol=1e-5, atol=1e-6), (l1, r1)

    # 2) Misaligned element count with an aligned prefix + plain-JAX tail.
    y2 = jax.random.normal(k3, (2, 3, 17, 13), dtype=jnp.float32)
    t2 = jax.random.normal(k4, (2, 3, 17, 13), dtype=jnp.float32)
    l2 = change_loss(y2, t2)
    jax.block_until_ready(l2)
    r2 = jnp.mean((y2 - t2) ** 2)
    assert jnp.allclose(l2, r2, rtol=1e-5, atol=1e-6), (l2, r2)

    # 3) Tiny input (< one tile) -> pure-JAX fallback path.
    y3 = jax.random.normal(k5, (2, 3, 7, 5), dtype=jnp.float32)
    t3 = jax.random.normal(k6, (2, 3, 7, 5), dtype=jnp.float32)
    l3 = change_loss(y3, t3)
    jax.block_until_ready(l3)
    r3 = jnp.mean((y3 - t3) ** 2)
    assert jnp.allclose(l3, r3, rtol=1e-5, atol=1e-6), (l3, r3)

    # 4) Medium multi-block input: exercises the 2-core parallel axis and the
    #    pl.when-gated ragged-row mask (rows = 9216 = 1 full + 1 partial block).
    y4 = jax.random.normal(k7, (2, 4, 384, 384), dtype=jnp.float32)
    t4 = jax.random.normal(k8, (2, 4, 384, 384), dtype=jnp.float32)
    l4 = change_loss(y4, t4)
    jax.block_until_ready(l4)
    r4 = jnp.mean(jnp.square(y4 - t4))
    assert jnp.allclose(l4, r4, rtol=2e-5, atol=1e-6), (l4, r4)

    print("KERNEL_OK")
</pallas_src>

<mosaic_0001>
module attributes {stable_mosaic.version = 11 : i64} {
  func.func @_mse_partial_kernel(%arg0: i32, %arg1: i32, %arg2: memref<16x128xf32, #tpu.memory_space<vmem>>, %arg3: memref<16x128xf32, #tpu.memory_space<vmem>>, %arg4: memref<16x128xf32, #tpu.memory_space<vmem>>) attributes {dimension_semantics = [#tpu.dimension_semantics<parallel>, #tpu.dimension_semantics<arbitrary>], iteration_bounds = array<i64: 1, 1>, scalar_prefetch = 0 : i64, scratch_operands = 0 : i64, tpu.core_type = #tpu.core_type<tc>, window_params = [{transform_indices = @transform_0, window_bounds = array<i64: 16, 128>}, {transform_indices = @transform_1, window_bounds = array<i64: 16, 128>}, {transform_indices = @transform_2, window_bounds = array<i64: 16, 128>}]} {
    %c0_i32 = arith.constant 0 : i32
    %0 = arith.cmpi eq, %arg1, %c0_i32 : i32
    %1 = arith.extui %0 : i1 to i32
    %c0_i32_0 = arith.constant 0 : i32
    %2 = arith.cmpi ne, %1, %c0_i32_0 : i32
    scf.if %2 {
      %cst_8 = arith.constant 0.000000e+00 : f32
      %12 = vector.broadcast %cst_8 : f32 to vector<16x128xf32>
      %c0_9 = arith.constant 0 : index
      %c0_10 = arith.constant 0 : index
      %13 = vector.load %arg4[%c0_9, %c0_10] : memref<16x128xf32, #tpu.memory_space<vmem>>, vector<16x128xf32>
      tpu.vector_store %arg4[%c0_9, %c0_10], %12 {strides = array<i32>} : memref<16x128xf32, #tpu.memory_space<vmem>>, vector<16x128xf32>,
    } else {
    }
    %c0 = arith.constant 0 : index
    %c0_1 = arith.constant 0 : index
    %3 = vector.load %arg2[%c0, %c0_1] : memref<16x128xf32, #tpu.memory_space<vmem>>, vector<16x128xf32>
    %c0_2 = arith.constant 0 : index
    %c0_3 = arith.constant 0 : index
    %4 = vector.load %arg3[%c0_2, %c0_3] : memref<16x128xf32, #tpu.memory_space<vmem>>, vector<16x128xf32>
    %5 = arith.subf %3, %4 : vector<16x128xf32>
    %6 = arith.mulf %5, %5 : vector<16x128xf32>
    %c0_4 = arith.constant 0 : index
    %c0_5 = arith.constant 0 : index
    %7 = vector.load %arg4[%c0_4, %c0_5] : memref<16x128xf32, #tpu.memory_space<vmem>>, vector<16x128xf32>
    %8 = vector.shape_cast %6 : vector<16x128xf32> to vector<1x16x128xf32>
    %cst = arith.constant dense<0.000000e+00> : vector<16x128xf32>
    %9 = vector.multi_reduction <add>, %8, %cst [0] : vector<1x16x128xf32> to vector<16x128xf32>
    %10 = arith.addf %7, %9 : vector<16x128xf32>
    %c0_6 = arith.constant 0 : index
    %c0_7 = arith.constant 0 : index
    %11 = vector.load %arg4[%c0_6, %c0_7] : memref<16x128xf32, #tpu.memory_space<vmem>>, vector<16x128xf32>
    tpu.vector_store %arg4[%c0_6, %c0_7], %10 {strides = array<i32>} : memref<16x128xf32, #tpu.memory_space<vmem>>, vector<16x128xf32>,
    return
  }
  func.func @transform_0(%arg0: i32, %arg1: i32) -> (i32, i32) {
    %c1_i32 = arith.constant 1 : i32
    %0 = arith.muli %arg0, %c1_i32 : i32
    %1 = arith.addi %0, %arg1 : i32
    %c0_i32 = arith.constant 0 : i32
    %c0_i32_0 = arith.constant 0 : i32
    return %1, %c0_i32 : i32, i32
  }
  func.func @transform_1(%arg0: i32, %arg1: i32) -> (i32, i32) {
    %c1_i32 = arith.constant 1 : i32
    %0 = arith.muli %arg0, %c1_i32 : i32
    %1 = arith.addi %0, %arg1 : i32
    %c0_i32 = arith.constant 0 : i32
    %c0_i32_0 = arith.constant 0 : i32
    return %1, %c0_i32 : i32, i32
  }
  func.func @transform_2(%arg0: i32, %arg1: i32) -> (i32, i32) {
    %c0_i32 = arith.constant 0 : i32
    %c0_i32_0 = arith.constant 0 : i32
    return %arg0, %c0_i32 : i32, i32
  }
}

</mosaic_0001>

<bundles_post_ra>
// kernel: tpu_custom_call.1
= control target key start
LH: loop header
LB: loop body
LE: loop exit
PB: predicated region body
PF: predicated region fallthrough
CT: control target
= control target key end

     0   :  { %7 = vsyncpa [#allocation3], 0  ;;  %s235_s0 = inlined_call_operand.hbm [shape: f32[16,128], index: 0, kind: input, shape index: {}]   ;;  %s236_s1 = inlined_call_operand.hbm [shape: f32[16,128], index: 1, kind: input, shape index: {}]   ;;  %s237_s2 = inlined_call_operand.hbm [shape: f32[16,128], index: 2, kind: output, shape index: {}]  }
   0x1   :  { %8 = vsyncpa [#allocation6], 0 }
   0x2   :  { %9 = vsyncpa [#allocation4], 0  ;;  %s170_s9 = smov [#allocation2]   ;;  %s98_s13 = scalar_lea.hbm %s235_s0, 256 }
   0x3   :  { %s19_s10 = sshll.u32 %s170_s9, 4  ;;  %p99_p0 = scmp.ne.s32.totalorder %s235_s0, %s98_s13  ;;  %s20_s10 = int_to_ptr.vmem [resolvable:$true] %s19_s10 }
   0x4   :  { %p102_p1 = scmp.lt.u32.totalorder %s98_s13, %s235_s0 }
   0x6   :  { %p104_p2 = pnand %p102_p1, %p99_p0 }
   0x8   :  { %107 = shalt.err (!%p104_p2)
}
   0x9   :  { %s108_s18 = scalar_lea.vmem %s20_s10, 256  ;;  %p113_p4 = scmp.lt.s32.totalorder %s20_s10, %s20_s10 }
   0xa   :  { %p109_p3 = scmp.ne.s32.totalorder %s20_s10, %s108_s18  ;;  %p114_p5 = scmp.lt.s32.totalorder %s108_s18, %s108_s18 }
   0xc   :  { %p115_p6 = por %p114_p5, %p113_p4 }
   0xe   :  { %p116_p7 = pnand %p115_p6, %p109_p3 }
  0x10   :  { %119 = shalt.err (!%p116_p7)
}
  0x11   :  { %s171_s19 = smov 128   ;;  %s172_s20 = smov 8  }
  0x12   :  { %25 = dma.hbm_to_vmem [thread:$0]  %s235_s0, 256, %s20_s10, [#allocation3], %s171_s19, %s171_s19, %s172_s20  }
  0x13   :  { %s173_s23 = smov [#allocation5]   ;;  %s120_s27 = scalar_lea.hbm %s236_s1, 256 }
  0x14   :  { %s35_s24 = sshll.u32 %s173_s23, 4  ;;  %p121_p8 = scmp.ne.s32.totalorder %s236_s1, %s120_s27  ;;  %s36_s24 = int_to_ptr.vmem [resolvable:$true] %s35_s24 }
  0x15   :  { %p124_p9 = scmp.lt.u32.totalorder %s120_s27, %s236_s1 }
  0x17   :  { %p126_p10 = pnand %p124_p9, %p121_p8 }
  0x19   :  { %129 = shalt.err (!%p126_p10)
}
  0x1a   :  { %s130_s4 = scalar_lea.vmem %s36_s24, 256  ;;  %p135_p12 = scmp.lt.s32.totalorder %s36_s24, %s36_s24 }
  0x1b   :  { %p131_p11 = scmp.ne.s32.totalorder %s36_s24, %s130_s4  ;;  %p136_p13 = scmp.lt.s32.totalorder %s130_s4, %s130_s4 }
  0x1d   :  { %p137_p0 = por %p136_p13, %p135_p12 }
  0x1f   :  { %p138_p1 = pnand %p137_p0, %p131_p11 }
  0x21   :  { %141 = shalt.err (!%p138_p1)
}
  0x22   :  { %41 = dma.hbm_to_vmem [thread:$0]  %s236_s1, 256, %s36_s24, [#allocation6], %s171_s19, %s171_s19, %s172_s20  }
  0x23   :  { %164 = dma.done.wait [#allocation3], 256  }
  0x24   :  { %165 = vsyncadd [#allocation3], 4294967040 }
  0x25   :  { %166 = dma.done.wait [#allocation6], 256  }
  0x26   :  { %167 = vsyncadd [#allocation6], 4294967040  ;;  %v58_v0 = vld [vmem:[#allocation2] sm:$0xff]  ;;  %v60_v1 = vld [vmem:[#allocation5] sm:$0xff]  ;;  %s174_s6 = smov [#allocation7]  }
  0x27   :  { %v59_v2 = vld [vmem:[#allocation2 + $0x8] sm:$0xff]  ;;  %v62_v3 = vsub.f32 %v58_v0, %v60_v1  ;;  %v61_v4 = vld [vmem:[#allocation5 + $0x8] sm:$0xff]  ;;  %s79_s7 = sshll.u32 %s174_s6, 4  ;;  %s80_s7 = int_to_ptr.vmem [resolvable:$true] %s79_s7 }
  0x28   :  { %v63_v5 = vsub.f32 %v59_v2, %v61_v4  ;;  %s142_s8 = scalar_lea.vmem %s80_s7, 256  ;;  %p147_p3 = scmp.lt.s32.totalorder %s80_s7, %s80_s7 }
  0x29   :  { %v64_v6 = vmul.f32 %v62_v3, %v62_v3  ;;  %p143_p2 = scmp.ne.s32.totalorder %s80_s7, %s142_s8  ;;  %p148_p4 = scmp.lt.s32.totalorder %s142_s8, %s142_s8 }
  0x2a   :  { %v65_v7 = vmul.f32 %v63_v5, %v63_v5 }
  0x2b   :  { %72 = vst [vmem:[#allocation7] sm:$0xff] %v64_v6  ;;  %p149_p5 = por %p148_p4, %p147_p3 }
  0x2c   :  { %73 = vst [vmem:[#allocation7 + $0x8] sm:$0xff] %v65_v7 }
  0x2d   :  { %p150_p6 = pnand %p149_p5, %p143_p2 }
  0x2f   :  { %153 = shalt.err (!%p150_p6)
}
  0x30   :  { %s154_s10 = scalar_lea.hbm %s237_s2, 256 }
  0x31   :  { %p155_p7 = scmp.ne.s32.totalorder %s237_s2, %s154_s10  ;;  %p158_p8 = scmp.lt.u32.totalorder %s154_s10, %s237_s2 }
  0x33   :  { %p160_p9 = pnand %p158_p8, %p155_p7 }
  0x35   :  { %163 = shalt.err (!%p160_p9)
}
  0x36   :  { %85 = dma.vmem_to_hbm [thread:$0]  %s80_s7, 256, %s237_s2, [#allocation4], %s171_s19, %s171_s19, %s172_s20  }
  0x37   :  { %168 = dma.done.wait [#allocation4], 256  }
  0x38   :  { %169 = vsyncadd [#allocation4], 4294967040 }
  0x39   :  { %89 = vsyncpa [#allocation3], 1 }
  0x3a   :  { %90 = vsyncpa [#allocation6], 1 }
  0x3b   :  { %91 = vsyncpa [#allocation4], 1 }

</bundles_post_ra>
